<compile_context>
chip_gen: v5e
topology: v5e:2x2
jax: 0.10.0
libtpu: 0.0.40
codegen_flags: <defaults>
</compile_context>

<pallas_src>
import jax
import jax.numpy as jnp
from jax.experimental import pallas as pl
from jax.experimental.pallas import tpu as pltpu


_PACK = 32  # batch elements packed per 128-lane row (4 input features each)


def _sigmoid(x):
    # Single EUP transcendental (tanh); the scale/shift run on the VALU.
    return 0.5 * jnp.tanh(0.5 * x) + 0.5


def bpnet_kernel(x_ref, w1_ref, b1_ref, w2_ref, b2_ref, o_ref):
    # Packed, lane-dense layout (P = 32 batch elements per row):
    #   x : (tr, 128)  lanes = [b0:4 feats, b1:4 feats, ..., b31:4 feats]
    #   w1: (128, 320) block-diagonal (32 copies of W1^T on the diagonal)
    #   b1: (1, 320)   b1 tiled 32x
    #   h : (tr, 320)  lanes = [b0:10 hidden, b1:10 hidden, ...]
    #   w2: (320, 96)  block-diagonal (32 copies of W2^T)
    #   b2: (1, 96)    b2 tiled 32x
    #   o : (tr, 96)   lanes = [b0:3 outs, b1:3 outs, ...]
    x = x_ref[...]
    h = jnp.dot(x, w1_ref[...], preferred_element_type=jnp.float32) + b1_ref[...]
    h = _sigmoid(h)
    y = jnp.dot(h, w2_ref[...], preferred_element_type=jnp.float32) + b2_ref[...]
    o_ref[...] = _sigmoid(y).astype(o_ref.dtype)


def bpnet_forward(x, w1, b1, w2, b2, *, block_rows=1024, min_grid_steps=2):
    """BPNet forward pass.

    x : (B, 4) float32
    w1: (10, 4), b1: (10,)   -- PyTorch nn.Linear layout (out, in)
    w2: (3, 10), b2: (3,)
    returns (B, 3) float32

    Fast path (no input copy at all) when B is a multiple of 32*block_rows;
    otherwise the batch is zero-padded once and the padding sliced off.
    """
    B, d_in = x.shape
    d_h = w1.shape[0]
    d_out = w2.shape[0]
    P = _PACK
    lane_in, lane_h, lane_out = P * d_in, P * d_h, P * d_out  # 128, 320, 96

    x = x.astype(jnp.float32)
    w1f, b1f = w1.astype(jnp.float32), b1.astype(jnp.float32)
    w2f, b2f = w2.astype(jnp.float32), b2.astype(jnp.float32)

    # Row tiling over the packed layout (one row == P batch elements).
    # block_rows=1024 -> 32768 batch elements / grid step; keep >= 2 grid steps
    # when the batch is large enough so v7x's two TensorCores both get work.
    R = pl.cdiv(B, P)
    tr = min(block_rows, max(8, 8 * pl.cdiv(R, 8 * min_grid_steps)))
    Rp = tr * pl.cdiv(R, tr)
    Bp = Rp * P

    if Bp != B:  # pad only when needed (demo-sized / ragged batches)
        x = jnp.pad(x, ((0, Bp - B), (0, 0)))
    # Metadata-only reshape: (Bp, 4) row-major == (Rp, 128) row-major.
    x_packed = x.reshape(Rp, lane_in)

    # Block-diagonal weights / tiled biases (tiny one-time prep, ~280 KiB total;
    # resident in VMEM via constant index_maps).
    eye = jnp.eye(P, dtype=jnp.float32)
    w1_big = jnp.einsum("pq,ij->piqj", eye, w1f.T).reshape(lane_in, lane_h)
    w2_big = jnp.einsum("pq,ij->piqj", eye, w2f.T).reshape(lane_h, lane_out)
    b1_big = jnp.tile(b1f, P).reshape(1, lane_h)
    b2_big = jnp.tile(b2f, P).reshape(1, lane_out)

    grid = (Rp // tr,)
    flops = 2 * (lane_in * lane_h + lane_h * lane_out) * Rp
    transcendentals = (d_h + d_out) * Bp  # one tanh per sigmoid output
    bytes_accessed = 4 * (lane_in + lane_out) * Rp + 4 * (
        w1_big.size + w2_big.size + b1_big.size + b2_big.size
    )

    out_packed = pl.pallas_call(
        bpnet_kernel,
        out_shape=jax.ShapeDtypeStruct((Rp, lane_out), jnp.float32),
        grid=grid,
        in_specs=[
            pl.BlockSpec((tr, lane_in), lambda i: (i, 0)),      # x tiles stream
            pl.BlockSpec((lane_in, lane_h), lambda i: (0, 0)),  # weights resident
            pl.BlockSpec((1, lane_h), lambda i: (0, 0)),
            pl.BlockSpec((lane_h, lane_out), lambda i: (0, 0)),
            pl.BlockSpec((1, lane_out), lambda i: (0, 0)),
        ],
        out_specs=pl.BlockSpec((tr, lane_out), lambda i: (i, 0)),
        compiler_params=pltpu.CompilerParams(
            dimension_semantics=("parallel",),   # megacore / v7x 2-TC sharding
            vmem_limit_bytes=32 * 1024 * 1024,   # footprint ~5 MiB, plenty of headroom
        ),
        cost_estimate=pl.CostEstimate(
            flops=flops,
            transcendentals=transcendentals,
            bytes_accessed=bytes_accessed,
        ),
    )(x_packed, w1_big, b1_big, w2_big, b2_big)

    # Metadata-only reshape back to (Bp, 3); slice only if we padded.
    out = out_packed.reshape(Bp, d_out)
    if Bp != B:
        out = out[:B]
    return out


def init_params(key):
    # PyTorch-style default init U(-1/sqrt(fan_in), 1/sqrt(fan_in)), PyTorch layout.
    k1, k2, k3, k4 = jax.random.split(key, 4)
    bound1 = 1.0 / jnp.sqrt(4.0)
    bound2 = 1.0 / jnp.sqrt(10.0)
    w1 = jax.random.uniform(k1, (10, 4), jnp.float32, -bound1, bound1)
    b1 = jax.random.uniform(k2, (10,), jnp.float32, -bound1, bound1)
    w2 = jax.random.uniform(k3, (3, 10), jnp.float32, -bound2, bound2)
    b2 = jax.random.uniform(k4, (3,), jnp.float32, -bound2, bound2)
    return w1, b1, w2, b2


def _reference(x, w1, b1, w2, b2):
    # PyTorch semantics: y = sigmoid(sigmoid(x @ W1.T + b1) @ W2.T + b2)
    return jax.nn.sigmoid(jax.nn.sigmoid(x @ w1.T + b1) @ w2.T + b2)


if __name__ == "__main__":
    key = jax.random.PRNGKey(0)
    pkey, xkey, xkey2 = jax.random.split(key, 3)
    w1, b1, w2, b2 = init_params(pkey)

    # Small demo batch (module takes (B, 4)).
    B = 8
    x = jax.random.normal(xkey, (B, 4), jnp.float32)
    out = jax.block_until_ready(bpnet_forward(x, w1, b1, w2, b2))
    ref = _reference(x, w1, b1, w2, b2)
    assert out.shape == (B, 3)
    assert jnp.allclose(out, ref, atol=1e-4, rtol=1e-4), "mismatch vs reference (B=8)"

    # Pad-free multi-tile path: exercises >=2 grid steps (megacore) and the
    # copy-free reshape contract.
    B2 = 4096
    x2 = jax.random.normal(xkey2, (B2, 4), jnp.float32)
    out2 = jax.block_until_ready(bpnet_forward(x2, w1, b1, w2, b2))
    ref2 = _reference(x2, w1, b1, w2, b2)
    assert out2.shape == (B2, 3)
    assert jnp.allclose(out2, ref2, atol=1e-4, rtol=1e-4), "mismatch vs reference (B=4096)"

    print("KERNEL_OK")
</pallas_src>

<mosaic_0001>
module attributes {stable_mosaic.version = 11 : i64} {
  func.func @bpnet_kernel(%arg0: i32, %arg1: memref<8x128xf32, #tpu.memory_space<vmem>>, %arg2: memref<128x320xf32, #tpu.memory_space<vmem>>, %arg3: memref<1x320xf32, #tpu.memory_space<vmem>>, %arg4: memref<320x96xf32, #tpu.memory_space<vmem>>, %arg5: memref<1x96xf32, #tpu.memory_space<vmem>>, %arg6: memref<8x96xf32, #tpu.memory_space<vmem>>) attributes {dimension_semantics = [#tpu.dimension_semantics<parallel>], iteration_bounds = array<i64: 1>, scalar_prefetch = 0 : i64, scratch_operands = 0 : i64, tpu.core_type = #tpu.core_type<tc>, window_params = [{transform_indices = @transform_0, window_bounds = array<i64: 8, 128>}, {pipeline_mode = #tpu.pipeline_mode<synchronous>, transform_indices = @transform_1, window_bounds = array<i64: 128, 320>}, {pipeline_mode = #tpu.pipeline_mode<synchronous>, transform_indices = @transform_2, window_bounds = array<i64: 1, 320>}, {pipeline_mode = #tpu.pipeline_mode<synchronous>, transform_indices = @transform_3, window_bounds = array<i64: 320, 96>}, {pipeline_mode = #tpu.pipeline_mode<synchronous>, transform_indices = @transform_4, window_bounds = array<i64: 1, 96>}, {transform_indices = @transform_5, window_bounds = array<i64: 8, 96>}]} {
    %c0 = arith.constant 0 : index
    %c0_0 = arith.constant 0 : index
    %0 = vector.load %arg1[%c0, %c0_0] : memref<8x128xf32, #tpu.memory_space<vmem>>, vector<8x128xf32>
    %c0_1 = arith.constant 0 : index
    %c0_2 = arith.constant 0 : index
    %1 = vector.load %arg2[%c0_1, %c0_2] : memref<128x320xf32, #tpu.memory_space<vmem>>, vector<128x320xf32>
    %cst = arith.constant dense<0.000000e+00> : vector<8x320xf32>
    %2 = tpu.matmul %0, %1, %cst {dimension_numbers = #tpu.dot_dimension_numbers<[1], [0], [0], [1], [0, 0, 1, 1], [], []>} : vector<8x128xf32>, vector<128x320xf32>, vector<8x320xf32> -> vector<8x320xf32>
    %c0_3 = arith.constant 0 : index
    %c0_4 = arith.constant 0 : index
    %3 = vector.load %arg3[%c0_3, %c0_4] : memref<1x320xf32, #tpu.memory_space<vmem>>, vector<1x320xf32>
    %4 = vector.broadcast %3 : vector<1x320xf32> to vector<8x320xf32>
    %5 = arith.addf %2, %4 : vector<8x320xf32>
    %cst_5 = arith.constant 5.000000e-01 : f32
    %6 = vector.broadcast %cst_5 : f32 to vector<8x320xf32>
    %7 = arith.mulf %6, %5 : vector<8x320xf32>
    %8 = math.tanh %7 : vector<8x320xf32>
    %cst_6 = arith.constant 5.000000e-01 : f32
    %9 = vector.broadcast %cst_6 : f32 to vector<8x320xf32>
    %10 = arith.mulf %9, %8 : vector<8x320xf32>
    %cst_7 = arith.constant 5.000000e-01 : f32
    %11 = vector.broadcast %cst_7 : f32 to vector<8x320xf32>
    %12 = arith.addf %10, %11 : vector<8x320xf32>
    %c0_8 = arith.constant 0 : index
    %c0_9 = arith.constant 0 : index
    %13 = vector.load %arg4[%c0_8, %c0_9] : memref<320x96xf32, #tpu.memory_space<vmem>>, vector<320x96xf32>
    %cst_10 = arith.constant dense<0.000000e+00> : vector<8x96xf32>
    %14 = tpu.matmul %12, %13, %cst_10 {dimension_numbers = #tpu.dot_dimension_numbers<[1], [0], [0], [1], [0, 0, 1, 1], [], []>} : vector<8x320xf32>, vector<320x96xf32>, vector<8x96xf32> -> vector<8x96xf32>
    %c0_11 = arith.constant 0 : index
    %c0_12 = arith.constant 0 : index
    %15 = vector.load %arg5[%c0_11, %c0_12] : memref<1x96xf32, #tpu.memory_space<vmem>>, vector<1x96xf32>
    %16 = vector.broadcast %15 : vector<1x96xf32> to vector<8x96xf32>
    %17 = arith.addf %14, %16 : vector<8x96xf32>
    %cst_13 = arith.constant 5.000000e-01 : f32
    %18 = vector.broadcast %cst_13 : f32 to vector<8x96xf32>
    %19 = arith.mulf %18, %17 : vector<8x96xf32>
    %20 = math.tanh %19 : vector<8x96xf32>
    %cst_14 = arith.constant 5.000000e-01 : f32
    %21 = vector.broadcast %cst_14 : f32 to vector<8x96xf32>
    %22 = arith.mulf %21, %20 : vector<8x96xf32>
    %cst_15 = arith.constant 5.000000e-01 : f32
    %23 = vector.broadcast %cst_15 : f32 to vector<8x96xf32>
    %24 = arith.addf %22, %23 : vector<8x96xf32>
    %c0_16 = arith.constant 0 : index
    %c0_17 = arith.constant 0 : index
    %25 = vector.load %arg6[%c0_16, %c0_17] : memref<8x96xf32, #tpu.memory_space<vmem>>, vector<8x96xf32>
    tpu.vector_store %arg6[%c0_16, %c0_17], %24 {strides = array<i32>} : memref<8x96xf32, #tpu.memory_space<vmem>>, vector<8x96xf32>,
    return
  }
  func.func @transform_0(%arg0: i32) -> (i32, i32) {
    %c0_i32 = arith.constant 0 : i32
    %c0_i32_0 = arith.constant 0 : i32
    return %arg0, %c0_i32 : i32, i32
  }
  func.func @transform_1(%arg0: i32) -> (i32, i32) {
    %c0_i32 = arith.constant 0 : i32
    %c0_i32_0 = arith.constant 0 : i32
    %c0_i32_1 = arith.constant 0 : i32
    return %c0_i32, %c0_i32_0 : i32, i32
  }
  func.func @transform_2(%arg0: i32) -> (i32, i32) {
    %c0_i32 = arith.constant 0 : i32
    %c0_i32_0 = arith.constant 0 : i32
    %c0_i32_1 = arith.constant 0 : i32
    return %c0_i32, %c0_i32_0 : i32, i32
  }
  func.func @transform_3(%arg0: i32) -> (i32, i32) {
    %c0_i32 = arith.constant 0 : i32
    %c0_i32_0 = arith.constant 0 : i32
    %c0_i32_1 = arith.constant 0 : i32
    return %c0_i32, %c0_i32_0 : i32, i32
  }
  func.func @transform_4(%arg0: i32) -> (i32, i32) {
    %c0_i32 = arith.constant 0 : i32
    %c0_i32_0 = arith.constant 0 : i32
    %c0_i32_1 = arith.constant 0 : i32
    return %c0_i32, %c0_i32_0 : i32, i32
  }
  func.func @transform_5(%arg0: i32) -> (i32, i32) {
    %c0_i32 = arith.constant 0 : i32
    %c0_i32_0 = arith.constant 0 : i32
    return %arg0, %c0_i32 : i32, i32
  }
}

</mosaic_0001>

<bundles_post_ra>
// kernel: tpu_custom_call.1
= control target key start
LH: loop header
LB: loop body
LE: loop exit
PB: predicated region body
PF: predicated region fallthrough
CT: control target
= control target key end

     0   :  { %s624_s0 = inlined_call_operand.vmem [shape: f32[8,128], index: 0, kind: input, shape index: {}]   ;;  %s625_s1 = inlined_call_operand.vmem [shape: f32[128,320], index: 1, kind: input, shape index: {}]   ;;  %s626_s2 = inlined_call_operand.vmem [shape: f32[1,320], index: 2, kind: input, shape index: {}]   ;;  %s627_s3 = inlined_call_operand.vmem [shape: f32[320,96], index: 3, kind: input, shape index: {}]   ;;  %s628_s4 = inlined_call_operand.vmem [shape: f32[1,96], index: 4, kind: input, shape index: {}]   ;;  %s629_s5 = inlined_call_operand.hbm [shape: f32[8,96], index: 5, kind: output, shape index: {}]  }
   0x1   :  { %v67_v0 = vld [vmem:[%s625_s1 + $0x168] sm:$0xff]  ;;  %v64_v1 = vld [vmem:[%s625_s1 + $0x150] sm:$0xff]  ;;  %v69_v2 = vld [vmem:[%s625_s1 + $0x178] sm:$0xff] }
   0x2   :  { %78 = vmatpush.msra.mxu0 %v67_v0  ;;  %v66_v3 = vld [vmem:[%s625_s1 + $0x160] sm:$0xff]  ;;  %v61_v4 = vld [vmem:[%s625_s1 + $0x138] sm:$0xff]  ;;  %118 = vmatpush.msra.mxu2 %v69_v2  ;;  %v68_v5 = vld [vmem:[%s625_s1 + $0x170] sm:$0xff] }
   0x3   :  { %98 = vmatpush.msra.mxu1 %v68_v5  ;;  %v63_v6 = vld [vmem:[%s625_s1 + $0x148] sm:$0xff]  ;;  %v65_v7 = vld [vmem:[%s625_s1 + $0x158] sm:$0xff]  ;;  %v58_v8 = vld [vmem:[%s625_s1 + $0x120] sm:$0xff] }
   0x4   :  { %79 = vmatpush.msra.mxu0 %v64_v1  ;;  %119 = vmatpush.msra.mxu2 %v66_v3  ;;  %v62_v9 = vld [vmem:[%s625_s1 + $0x140] sm:$0xff]  ;;  %v60_v10 = vld [vmem:[%s625_s1 + $0x130] sm:$0xff]  ;;  %v55_v11 = vld [vmem:[%s625_s1 + $0x108] sm:$0xff] }
   0x5   :  { %99 = vmatpush.msra.mxu1 %v65_v7  ;;  %v59_v12 = vld [vmem:[%s625_s1 + $0x128] sm:$0xff]  ;;  %v57_v13 = vld [vmem:[%s625_s1 + $0x118] sm:$0xff]  ;;  %v52_v14 = vld [vmem:[%s625_s1 + $0xf0] sm:$0xff] }
   0x6   :  { %80 = vmatpush.msra.mxu0 %v61_v4  ;;  %120 = vmatpush.msra.mxu2 %v63_v6  ;;  %v56_v15 = vld [vmem:[%s625_s1 + $0x110] sm:$0xff]  ;;  %v54_v16 = vld [vmem:[%s625_s1 + $0x100] sm:$0xff]  ;;  %v49_v17 = vld [vmem:[%s625_s1 + $0xd8] sm:$0xff] }
   0x7   :  { %100 = vmatpush.msra.mxu1 %v62_v9  ;;  %v53_v18 = vld [vmem:[%s625_s1 + $0xf8] sm:$0xff]  ;;  %v51_v19 = vld [vmem:[%s625_s1 + $0xe8] sm:$0xff]  ;;  %v46_v20 = vld [vmem:[%s625_s1 + $0xc0] sm:$0xff] }
   0x8   :  { %81 = vmatpush.msra.mxu0 %v58_v8  ;;  %121 = vmatpush.msra.mxu2 %v60_v10  ;;  %v50_v21 = vld [vmem:[%s625_s1 + $0xe0] sm:$0xff]  ;;  %v48_v22 = vld [vmem:[%s625_s1 + $0xd0] sm:$0xff]  ;;  %v43_v23 = vld [vmem:[%s625_s1 + $0xa8] sm:$0xff] }
   0x9   :  { %101 = vmatpush.msra.mxu1 %v59_v12  ;;  %v47_v24 = vld [vmem:[%s625_s1 + $0xc8] sm:$0xff]  ;;  %v45_v25 = vld [vmem:[%s625_s1 + $0xb8] sm:$0xff]  ;;  %v40_v26 = vld [vmem:[%s625_s1 + $0x90] sm:$0xff] }
   0xa   :  { %82 = vmatpush.msra.mxu0 %v55_v11  ;;  %122 = vmatpush.msra.mxu2 %v57_v13  ;;  %v44_v27 = vld [vmem:[%s625_s1 + $0xb0] sm:$0xff]  ;;  %v165_v28 = vld [vmem:[%s627_s3 + $0x78] sm:$0xff]  ;;  %v42_v29 = vld [vmem:[%s625_s1 + $0xa0] sm:$0xff] }
   0xb   :  { %102 = vmatpush.msra.mxu1 %v56_v15  ;;  %v164_v30 = vld [vmem:[%s627_s3 + $0x70] sm:$0xff]  ;;  %v37_v31 = vld [vmem:[%s625_s1 + $0x78] sm:$0xff]  ;;  %198 = vmatpush.msra.mxu3 %v165_v28  ;;  %v39_v33 = vld [vmem:[%s625_s1 + $0x88] sm:$0xff] }
   0xc   :  { %83 = vmatpush.msra.mxu0 %v52_v14  ;;  %123 = vmatpush.msra.mxu2 %v54_v16  ;;  %v41_v32 = vld [vmem:[%s625_s1 + $0x98] sm:$0xff]  ;;  %v163_v34 = vld [vmem:[%s627_s3 + $0x68] sm:$0xff]  ;;  %v34_v35 = vld [vmem:[%s625_s1 + $0x60] sm:$0xff] }
   0xd   :  { %103 = vmatpush.msra.mxu1 %v53_v18  ;;  %v38_v36 = vld [vmem:[%s625_s1 + $0x80] sm:$0xff]  ;;  %199 = vmatpush.msra.mxu3 %v164_v30  ;;  %v36_v37 = vld [vmem:[%s625_s1 + $0x70] sm:$0xff] }
   0xe   :  { %84 = vmatpush.msra.mxu0 %v49_v17  ;;  %124 = vmatpush.msra.mxu2 %v51_v19  ;;  %v162_v38 = vld [vmem:[%s627_s3 + $0x60] sm:$0xff] }
   0xf   :  { %104 = vmatpush.msra.mxu1 %v50_v21 }
  0x10   :  { %85 = vmatpush.msra.mxu0 %v46_v20  ;;  %125 = vmatpush.msra.mxu2 %v48_v22 }
  0x11   :  { %105 = vmatpush.msra.mxu1 %v47_v24 }
  0x12   :  { %86 = vmatpush.msra.mxu0 %v43_v23  ;;  %126 = vmatpush.msra.mxu2 %v45_v25 }
  0x13   :  { %106 = vmatpush.msra.mxu1 %v44_v27 }
  0x14   :  { %87 = vmatpush.msra.mxu0 %v40_v26  ;;  %127 = vmatpush.msra.mxu2 %v42_v29 }
  0x15   :  { %107 = vmatpush.msra.mxu1 %v41_v32 }
  0x16   :  { %88 = vmatpush.msra.mxu0 %v37_v31 }
  0x17   :  { %10 = vsyncpa [#allocation3], 0  ;;  %v31_v39 = vld [vmem:[%s625_s1 + $0x48] sm:$0xff]  ;;  %128 = vmatpush.msra.mxu2 %v39_v33  ;;  %200 = vmatpush.msra.mxu3 %v163_v34  ;;  %v33_v41 = vld [vmem:[%s625_s1 + $0x58] sm:$0xff]  ;;  %vm194_vm0 = vcmask 523264   ;;  %s317_s17 = smov [#allocation2]  }
  0x18   :  { %v35_v40 = vld [vmem:[%s625_s1 + $0x68] sm:$0xff]  ;;  %89 = vmatpush.msra.mxu0 %v34_v35  ;;  %108 = vmatpush.msra.mxu1 %v38_v36  ;;  %v161_v42 = vld [vmem:[%s627_s3 + $0x58] sm:$0xff]  ;;  %v28_v43 = vld [vmem:[%s625_s1 + $0x30] sm:$0xff]  ;;  %s269_s18 = sshll.u32 %s317_s17, 4  ;;  %s271_s21 = sshll.u32 %s629_s5, 4  ;;  %vm262_vm1 = vcmask 785408   ;;  %s270_s18 = int_to_ptr.vmem [resolvable:$true] %s269_s18  ;;  %s272_s21 = int_to_ptr.hbm [resolvable:$true] %s271_s21 }
  0x19   :  { %129 = vmatpush.msra.mxu2 %v36_v37  ;;  %v32_v44 = vld [vmem:[%s625_s1 + $0x50] sm:$0xff]  ;;  %201 = vmatpush.msra.mxu3 %v162_v38  ;;  %v30_v45 = vld [vmem:[%s625_s1 + $0x40] sm:$0xff]  ;;  %v25_v47 = vld [vmem:[%s625_s1 + $0x18] sm:$0xff] }
  0x1a   :  { %90 = vmatpush.msra.mxu0 %v31_v39  ;;  %109 = vmatpush.msra.mxu1 %v35_v40  ;;  %v160_v46 = vld [vmem:[%s627_s3 + $0x50] sm:$0xff]  ;;  %v29_v48 = vld [vmem:[%s625_s1 + $0x38] sm:$0xff]  ;;  %v27_v49 = vld [vmem:[%s625_s1 + $0x28] sm:$0xff] }
  0x1b   :  { %130 = vmatpush.msra.mxu2 %v33_v41  ;;  %202 = vmatpush.msra.mxu3 %v161_v42  ;;  %v159_v50 = vld [vmem:[%s627_s3 + $0x48] sm:$0xff]  ;;  %v22_v51 = vld [vmem:[%s625_s1] sm:$0xff]  ;;  %v24_v54 = vld [vmem:[%s625_s1 + $0x10] sm:$0xff] }
  0x1c   :  { %91 = vmatpush.msra.mxu0 %v28_v43  ;;  %110 = vmatpush.msra.mxu1 %v32_v44  ;;  %v26_v52 = vld [vmem:[%s625_s1 + $0x20] sm:$0xff]  ;;  %v23_v55 = vld [vmem:[%s625_s1 + $0x8] sm:$0xff]  ;;  %v181_v56 = vld [vmem:[%s627_s3 + $0xf8] sm:$0xff] }
  0x1d   :  { %131 = vmatpush.msra.mxu2 %v30_v45  ;;  %203 = vmatpush.msra.mxu3 %v160_v46  ;;  %v21_v53 = vld [vmem:[%s624_s0] sm:$0xff]  ;;  %v180_v58 = vld [vmem:[%s627_s3 + $0xf0] sm:$0xff]  ;;  %v179_v59 = vld [vmem:[%s627_s3 + $0xe8] sm:$0xff] }
  0x1e   :  { %92 = vmatpush.msra.mxu0 %v25_v47  ;;  %111 = vmatpush.msra.mxu1 %v29_v48  ;;  %v158_v57 = vld [vmem:[%s627_s3 + $0x40] sm:$0xff]  ;;  %v157_v61 = vld [vmem:[%s627_s3 + $0x38] sm:$0xff]  ;;  %v156_v63 = vld [vmem:[%s627_s3 + $0x30] sm:$0xff] }
  0x1f   :  { %132 = vmatpush.msra.mxu2 %v27_v49  ;;  %204 = vmatpush.msra.mxu3 %v159_v50  ;;  %v178_v60 = vld [vmem:[%s627_s3 + $0xe0] sm:$0xff]  ;;  %v177_v62 = vld [vmem:[%s627_s3 + $0xd8] sm:$0xff]  ;;  %v176_v0 = vld [vmem:[%s627_s3 + $0xd0] sm:$0xff] }
  0x20   :  { %93 = vmatpush.msra.mxu0 %v22_v51  ;;  %112 = vmatpush.msra.mxu1 %v26_v52  ;;  %v155_v1 = vld [vmem:[%s627_s3 + $0x28] sm:$0xff]  ;;  %v154_v3 = vld [vmem:[%s627_s3 + $0x20] sm:$0xff]  ;;  %v153_v5 = vld [vmem:[%s627_s3 + $0x18] sm:$0xff] }
  0x21   :  { %94 = vmatmul.f32.vlgmr.msra.gmra.mxu0 %v21_v53  ;;  %133 = vmatpush.msra.mxu2 %v24_v54  ;;  %v175_v2 = vld [vmem:[%s627_s3 + $0xc8] sm:$0xff]  ;;  %v174_v4 = vld [vmem:[%s627_s3 + $0xc0] sm:$0xff]  ;;  %v173_v6 = vld [vmem:[%s627_s3 + $0xb8] sm:$0xff] }
  0x22   :  { %134 = vmatmul.f32.vlgmr.msra.gmra.mxu2 %v21_v53  ;;  %113 = vmatpush.msra.mxu1 %v23_v55  ;;  %v152_v7 = vld [vmem:[%s627_s3 + $0x10] sm:$0xff]  ;;  %v189_v9 = vld [vmem:[%s627_s3 + $0x138] sm:$0xff]  ;;  %v151_v10 = vld [vmem:[%s627_s3 + $0x8] sm:$0xff] }
  0x23   :  { %114 = vmatmul.f32.vlgmr.msra.gmra.mxu1 %v21_v53  ;;  %218 = vmatpush.msrb.mxu0 %v181_v56  ;;  %v172_v8 = vld [vmem:[%s627_s3 + $0xb0] sm:$0xff]  ;;  %v171_v11 = vld [vmem:[%s627_s3 + $0xa8] sm:$0xff]  ;;  %v150_v13 = vld [vmem:[%s627_s3] sm:$0xff] }
  0x24   :  { %205 = vmatpush.msra.mxu3 %v158_v57  ;;  %246 = vmatpush.msrb.mxu1 %v189_v9  ;;  %v188_v12 = vld [vmem:[%s627_s3 + $0x130] sm:$0xff]  ;;  %v170_v14 = vld [vmem:[%s627_s3 + $0xa0] sm:$0xff]  ;;  %v187_v15 = vld [vmem:[%s627_s3 + $0x128] sm:$0xff] }
  0x25   :  { %219 = vmatpush.msrb.mxu0 %v180_v58  ;;  %v169_v16 = vld [vmem:[%s627_s3 + $0x98] sm:$0xff]  ;;  %v186_v17 = vld [vmem:[%s627_s3 + $0x120] sm:$0xff]  ;;  %v168_v18 = vld [vmem:[%s627_s3 + $0x90] sm:$0xff] }
  0x26   :  { %206 = vmatpush.msra.mxu3 %v157_v61  ;;  %247 = vmatpush.msrb.mxu1 %v188_v12  ;;  %v185_v19 = vld [vmem:[%s627_s3 + $0x118] sm:$0xff]  ;;  %v167_v20 = vld [vmem:[%s627_s3 + $0x88] sm:$0xff]  ;;  %v184_v21 = vld [vmem:[%s627_s3 + $0x110] sm:$0xff] }
  0x27   :  { %220 = vmatpush.msrb.mxu0 %v179_v59  ;;  %v166_v22 = vld [vmem:[%s627_s3 + $0x80] sm:$0xff]  ;;  %v183_v23 = vld [vmem:[%s627_s3 + $0x108] sm:$0xff] }
  0x28   :  { %207 = vmatpush.msra.mxu3 %v156_v63  ;;  %248 = vmatpush.msrb.mxu1 %v187_v15  ;;  %v182_v24 = vld [vmem:[%s627_s3 + $0x100] sm:$0xff] }
  0x29   :  { %221 = vmatpush.msrb.mxu0 %v178_v60  ;;  %v70_v25 = vld [vmem:[%s626_s2] sm:$0x7] }
  0x2a   :  { %208 = vmatpush.msra.mxu3 %v155_v1  ;;  %249 = vmatpush.msrb.mxu1 %v186_v17  ;;  %v72_v26 = vperm.slane %v70_v25, 0  ;;  %v73_v27 = vperm.slane %v70_v25, 1  ;;  %v74_v33 = vperm.slane %v70_v25, 2  ;;  %v282_v47 = vld [vmem:[%s628_s4] ss:$0 sm:$0xff] }
  0x2b   :  { %222 = vmatpush.msrb.mxu0 %v177_v62 }
  0x2c   :  { %209 = vmatpush.msra.mxu3 %v154_v3  ;;  %250 = vmatpush.msrb.mxu1 %v185_v19 }
  0x2d   :  { %223 = vmatpush.msrb.mxu0 %v176_v0 }
  0x2e   :  { %210 = vmatpush.msra.mxu3 %v153_v5  ;;  %251 = vmatpush.msrb.mxu1 %v184_v21 }
  0x2f   :  { %224 = vmatpush.msrb.mxu0 %v175_v2 }
  0x30   :  { %211 = vmatpush.msra.mxu3 %v152_v7  ;;  %252 = vmatpush.msrb.mxu1 %v183_v23 }
  0x31   :  { %225 = vmatpush.msrb.mxu0 %v174_v4 }
  0x32   :  { %212 = vmatpush.msra.mxu3 %v151_v10  ;;  %253 = vmatpush.msrb.mxu1 %v182_v24 }
  0x33   :  { %226 = vmatpush.msrb.mxu0 %v173_v6 }
  0x34   :  { %213 = vmatpush.msra.mxu3 %v150_v13 }
  0x35   :  { %227 = vmatpush.msrb.mxu0 %v172_v8 }
  0x37   :  { %228 = vmatpush.msrb.mxu0 %v171_v11 }
  0x39   :  { %229 = vmatpush.msrb.mxu0 %v170_v14 }
  0x3b   :  { %230 = vmatpush.msrb.mxu0 %v169_v16 }
  0x3d   :  { %231 = vmatpush.msrb.mxu0 %v168_v18 }
  0x3f   :  { %232 = vmatpush.msrb.mxu0 %v167_v20 }
  0x41   :  { %233 = vmatpush.msrb.mxu0 %v166_v22 }
  0x9e   :  { %v95_v28 = vpop.f32.mrf.mxu0 }
  0x9f   :  { %v96_v29 = vadd.f32 %v95_v28, %v72_v26 }
  0xa0   :  { %v115_v30 = vpop.f32.mrf.mxu1 }
  0xa1   :  { %v138_v31 = vmul.f32 0.5, %v96_v29  ;;  %v116_v32 = vadd.f32 %v115_v30, %v73_v27 }
  0xa3   :  { %283 = vtanh.f32 %v138_v31  ;;  %v139_v34 = vmul.f32 0.5, %v116_v32 }
  0xa5   :  { %285 = vtanh.f32 %v139_v34  ;;  %v135_v35 = vpop.f32.mrf.mxu2 }
  0xa6   :  { %v136_v36 = vadd.f32 %v135_v35, %v74_v33 }
  0xa8   :  { %v140_v37 = vmul.f32 0.5, %v136_v36 }
  0xa9   :  { %v284_v38 = vpop.eup %283 }
  0xaa   :  { %287 = vtanh.f32 %v140_v37  ;;  %v144_v39 = vmul.f32 0.5, %v284_v38 }
  0xab   :  { %v286_v40 = vpop.eup %285 }
  0xac   :  { %v145_v41 = vmul.f32 0.5, %v286_v40  ;;  %v147_v42 = vadd.f32 0.5, %v144_v39 }
  0xae   :  { %v148_v43 = vadd.f32 0.5, %v145_v41  ;;  %214 = vmatmul.f32.vlgmr.msra.gmra.mxu3 %v147_v42 }
  0xb0   :  { %v288_v44 = vpop.eup %287  ;;  %234 = vmatmul.f32.vlgmr.msrb.gmra.mxu0 %v148_v43 }
  0xb1   :  { %v146_v45 = vmul.f32 0.5, %v288_v44 }
  0xb3   :  { %v149_v46 = vadd.f32 0.5, %v146_v45 }
  0xb5   :  { %280 = vmatmul.msk.f32.vlgmr.msrb.gmra.mxu1 %vm194_vm0, %v149_v46 }
 0x12d   :  { %v235_v49 = vpop.f32.mrf.mxu0 }
 0x131   :  { %v215_v48 = vpop.f32.mrf.mxu3 }
 0x132   :  { %v216_v50 = vadd.f32 %v282_v47, %v215_v48  ;;  %v255_v51 = vpop.f32.mrf.mxu1 }
 0x134   :  { %v236_v52 = vadd.f32 %v235_v49, %v216_v50 }
 0x136   :  { %v256_v53 = vadd.f32 %v255_v51, %v236_v52 }
 0x138   :  { %v258_v54 = vmul.f32 0.5, %v256_v53 }
 0x13a   :  { %289 = vtanh.f32 %v258_v54 }
 0x140   :  { %v290_v55 = vpop.eup %289 }
 0x141   :  { %v260_v56 = vmul.f32 0.5, %v290_v55 }
 0x143   :  { %v261_v57 = vadd.f32 0.5, %v260_v56 }
 0x145   :  { %263 = vst.msk [vmem:[#allocation2] sm:$0xff] %vm262_vm1, %v261_v57 }
 0x146   :  { %274 = dma.vmem_to_hbm [thread:$0]  %s270_s18, 128, %s272_s21, [#allocation3]  }
 0x147   :  { %315 = dma.done.wait [#allocation3], 128  }
 0x148   :  { %316 = vsyncadd [#allocation3], 4294967168 }
 0x149   :  { %279 = vsyncpa [#allocation3], 1 }

</bundles_post_ra>
